<compile_context>
chip_gen: v6e
topology: v6e:2x2x1
jax: 0.10.0
libtpu: 0.0.40
codegen_flags: <defaults>
</compile_context>

<pallas_src>
import functools
import math

import numpy as np

import jax
import jax.numpy as jnp
from jax.experimental import pallas as pl
from jax.experimental.pallas import tpu as pltpu

_LANE = 128
_SUBLANE = 8
_MAX_BLOCK_ROWS = 1024                      # 512-1024 rows ~ HBM roofline
_VMEM_BUDGET_BYTES = 8 * 1024 * 1024        # 2 outputs x 2 pipeline buffers
_VMEM_LIMIT_BYTES = 32 * 1024 * 1024        # safe on v5e/v6e/v7x


# --------------------------------------------------------------------------
# Fused sincos: shared Cody-Waite range reduction (mod pi/2), two polynomial
# tails, quadrant select.  f32 throughout; positions are < 2^24 so n*Ck stays
# exact enough for < 1e-6 absolute error over typical RoPE argument ranges.
# --------------------------------------------------------------------------
_TWO_OVER_PI = 0.6366197723675814
_PIO2_1 = 1.5703125                       # pi/2 head (few mantissa bits)
_PIO2_2 = 4.837512969970703e-04
_PIO2_3 = 7.549789948768648e-08
_SIN_C1 = -1.6666654611e-01
_SIN_C2 = 8.3321608736e-03
_SIN_C3 = -1.9515295891e-04
_COS_C1 = 4.166664568298827e-02
_COS_C2 = -1.388731625493765e-03
_COS_C3 = 2.443315711809948e-05


def _sincos(x):
    """Returns (sin(x), cos(x)) for non-negative f32 x with one reduction."""
    n = jnp.floor(x * _TWO_OVER_PI + 0.5)            # nearest quadrant
    r = x - n * _PIO2_1
    r = r - n * _PIO2_2
    r = r - n * _PIO2_3                               # |r| <= pi/4 (+eps)
    r2 = r * r
    sin_r = r + r * r2 * (_SIN_C1 + r2 * (_SIN_C2 + r2 * _SIN_C3))
    cos_r = 1.0 - 0.5 * r2 + r2 * r2 * (_COS_C1 + r2 * (_COS_C2 + r2 * _COS_C3))
    n_i = n.astype(jnp.int32)
    odd = jnp.bitwise_and(n_i, 1) == 1                # quadrant 1 or 3
    sin_neg = jnp.bitwise_and(n_i, 2) == 2            # quadrants 2, 3
    cos_neg = jnp.bitwise_and(n_i + 1, 2) == 2        # quadrants 1, 2
    sin_sel = jnp.where(odd, cos_r, sin_r)
    cos_sel = jnp.where(odd, sin_r, cos_r)
    sin_x = jnp.where(sin_neg, -sin_sel, sin_sel)
    cos_x = jnp.where(cos_neg, -cos_sel, cos_sel)
    return sin_x, cos_x


# --------------------------------------------------------------------------
# Kernel 1: flat lane-dense slab (any dim with dim % 256 != 0, incl. dim=128).
# The cache is viewed as a row-major flat buffer (rows, L), L = lcm(dim, 128):
# lane c of row r holds dim-index (c % dim) of position (r*ppr + c//dim).
# Per-lane inv_freq / position-offset tables are precomputed in the wrapper,
# so the kernel is one broadcast add + one broadcast mul + fused sincos, with
# full-width unmasked stores.
# --------------------------------------------------------------------------
def _rope_flat_kernel(ppr, inv_ref, off_ref, cos_ref, sin_ref):
    block_rows = cos_ref.shape[0]
    row0 = pl.program_id(0) * block_rows

    rows_i = row0 + jax.lax.broadcasted_iota(jnp.int32, (block_rows, 1), 0)
    base = rows_i.astype(jnp.float32) * float(ppr)        # (block, 1), exact
    if ppr > 1:
        pos = base + off_ref[...]                         # (block, L), exact
    else:
        pos = base                                        # broadcasts in mul
    x = pos * inv_ref[...]                                # (block, L) f32

    s, c = _sincos(x)
    cos_ref[...] = c.astype(cos_ref.dtype)
    sin_ref[...] = s.astype(sin_ref.dtype)


def _choose_block_rows(total_rows, row_bytes, cap_rows):
    budget_rows = _VMEM_BUDGET_BYTES // (4 * row_bytes)   # 2 outs x 2 buffers
    budget_rows = max(_SUBLANE, (budget_rows // _SUBLANE) * _SUBLANE)
    cap = min(budget_rows, cap_rows)
    if total_rows <= cap:
        return total_rows           # single block == full array dim (allowed)
    return cap                      # multiple of 8; last block may be ragged


def _rope_cache_flat(inv_freq, seq_len, dim, out_dtype,
                     block_rows_cap=_MAX_BLOCK_ROWS):
    half = dim // 2
    L = (dim * _LANE) // math.gcd(dim, _LANE)             # lcm(dim, 128)
    ppr = L // dim                                        # positions per row

    rows = -(-seq_len // ppr)                             # ceil
    block_rows = _choose_block_rows(rows, L * 4, block_rows_cap)
    grid = (pl.cdiv(rows, block_rows),)

    col = jnp.arange(L, dtype=jnp.int32)
    col_inv = inv_freq[(col % dim) % half].reshape(1, L).astype(jnp.float32)
    col_off = (col // dim).astype(jnp.float32).reshape(1, L)

    cos_flat, sin_flat = pl.pallas_call(
        functools.partial(_rope_flat_kernel, ppr),
        out_shape=(
            jax.ShapeDtypeStruct((rows, L), out_dtype),
            jax.ShapeDtypeStruct((rows, L), out_dtype),
        ),
        grid_spec=pltpu.PrefetchScalarGridSpec(
            num_scalar_prefetch=0,
            grid=grid,
            in_specs=[
                pl.BlockSpec((1, L), lambda i: (0, 0)),
                pl.BlockSpec((1, L), lambda i: (0, 0)),
            ],
            out_specs=[
                pl.BlockSpec((block_rows, L), lambda i: (i, 0)),
                pl.BlockSpec((block_rows, L), lambda i: (i, 0)),
            ],
        ),
        compiler_params=pltpu.CompilerParams(
            dimension_semantics=("parallel",),
            vmem_limit_bytes=_VMEM_LIMIT_BYTES,
        ),
    )(col_inv, col_off)

    padded_pos = rows * ppr                               # >= seq_len
    cos = cos_flat.reshape(padded_pos, dim)               # free row-major view
    sin = sin_flat.reshape(padded_pos, dim)
    return cos, sin


# --------------------------------------------------------------------------
# Kernel 2: half-mirror path, only for dim % 256 == 0 (half is a multiple of
# 128).  cos/sin are evaluated on the half-width freqs only and mirrored into
# both lane-aligned halves of the output tile -> genuinely half the compute
# and every store stays unmasked.
# --------------------------------------------------------------------------
def _rope_mirror_kernel(inv_ref, cos_ref, sin_ref):
    block_rows = cos_ref.shape[0]
    half = inv_ref.shape[1]
    row0 = pl.program_id(0) * block_rows

    rows_i = row0 + jax.lax.broadcasted_iota(jnp.int32, (block_rows, 1), 0)
    x = rows_i.astype(jnp.float32) * inv_ref[...]         # (block, half)

    s, c = _sincos(x)
    c = c.astype(cos_ref.dtype)
    s = s.astype(sin_ref.dtype)
    cos_ref[:, :half] = c
    cos_ref[:, half:] = c
    sin_ref[:, :half] = s
    sin_ref[:, half:] = s


def _rope_cache_mirror(inv_freq, seq_len, dim, out_dtype,
                       block_rows_cap=_MAX_BLOCK_ROWS):
    half = dim // 2
    block_rows = _choose_block_rows(seq_len, dim * 4, block_rows_cap)
    grid = (pl.cdiv(seq_len, block_rows),)
    inv2d = inv_freq.reshape(1, half).astype(jnp.float32)

    cos, sin = pl.pallas_call(
        _rope_mirror_kernel,
        out_shape=(
            jax.ShapeDtypeStruct((seq_len, dim), out_dtype),
            jax.ShapeDtypeStruct((seq_len, dim), out_dtype),
        ),
        grid_spec=pltpu.PrefetchScalarGridSpec(
            num_scalar_prefetch=0,
            grid=grid,
            in_specs=[pl.BlockSpec((1, half), lambda i: (0, 0))],
            out_specs=[
                pl.BlockSpec((block_rows, dim), lambda i: (i, 0)),
                pl.BlockSpec((block_rows, dim), lambda i: (i, 0)),
            ],
        ),
        compiler_params=pltpu.CompilerParams(
            dimension_semantics=("parallel",),
            vmem_limit_bytes=_VMEM_LIMIT_BYTES,
        ),
    )(inv2d)
    return cos, sin


class RotaryEmbedding:
    """JAX/Pallas equivalent of the PyTorch RotaryEmbedding module."""

    def __init__(self, dim: int, max_seq_len: int, base: int = 10000,
                 cache_dtype=jnp.float32):
        assert dim % 2 == 0, "RoPE dim must be even"
        self.dim = dim
        self.max_seq_len = max_seq_len
        self.base = base
        self.cache_dtype = cache_dtype

        # Buffer setup (glue, plain JAX): inv_freq of shape (dim // 2,)
        self.inv_freq = 1.0 / (
            base ** (jnp.arange(0, dim, 2, dtype=jnp.float32) / dim)
        )
        self.max_seq_len_cached = None
        self.cos_cached = None
        self.sin_cached = None
        self._set_cos_sin_cache(max_seq_len)

    def _set_cos_sin_cache(self, seq_len: int):
        self.max_seq_len_cached = seq_len
        if self.dim % (2 * _LANE) == 0:
            cos, sin = _rope_cache_mirror(self.inv_freq, seq_len, self.dim,
                                          self.cache_dtype)
        else:
            cos, sin = _rope_cache_flat(self.inv_freq, seq_len, self.dim,
                                        self.cache_dtype)
        # Cache may hold a few padded positions beyond seq_len (flat path);
        # __call__ slices to the requested length exactly like the reference.
        self.cos_cached = cos[None, None, :, :]
        self.sin_cached = sin[None, None, :, :]

    def __call__(self, seq_len: int):
        if seq_len > self.max_seq_len_cached:
            self._set_cos_sin_cache(seq_len)
        return (
            self.cos_cached[:, :, :seq_len, ...],
            self.sin_cached[:, :, :seq_len, ...],
        )


# --------------------------------------------------------------------------
# Reference / tests
# --------------------------------------------------------------------------
def _reference_np(inv_freq_f32, seq_len):
    """Reference emb = concat([t*inv_freq, t*inv_freq]); args rounded in f32
    exactly like the kernel, cos/sin taken in float64 on the host."""
    t = np.arange(seq_len, dtype=np.float32)
    freqs = t[:, None] * np.asarray(inv_freq_f32, dtype=np.float32)
    emb = np.concatenate([freqs, freqs], axis=-1).astype(np.float64)
    return np.cos(emb)[None, None], np.sin(emb)[None, None]


def _check(cos, sin, inv_freq, seq_len, dim, tag, atol=1e-5):
    cos_r, sin_r = _reference_np(np.asarray(inv_freq), seq_len)
    assert cos.shape == (1, 1, seq_len, dim), (tag, cos.shape)
    assert sin.shape == (1, 1, seq_len, dim), (tag, sin.shape)
    assert np.allclose(np.asarray(cos, np.float64), cos_r, atol=atol), tag + " cos"
    assert np.allclose(np.asarray(sin, np.float64), sin_r, atol=atol), tag + " sin"


if __name__ == "__main__":
    # RoPE cache is fully deterministic from (dim, base); key mirrors protocol.
    _ = jax.random.PRNGKey(0)

    # 1) dim=32: flat lane-dense slab (4 positions per 128-lane row), padded
    #    cache rows, call-time slice to a non-row-aligned seq_len.
    rope = RotaryEmbedding(dim=32, max_seq_len=16)
    cos, sin = rope(10)
    cos = jax.block_until_ready(cos)
    sin = jax.block_until_ready(sin)
    _check(cos, sin, rope.inv_freq, 10, 32, "flat dim=32")

    # 2) dim=128: now full-width flat path (no half-mirror) -> unmasked
    #    128-lane stores.
    rope2 = RotaryEmbedding(dim=128, max_seq_len=32)
    cos2, sin2 = rope2(32)
    cos2 = jax.block_until_ready(cos2)
    sin2 = jax.block_until_ready(sin2)
    _check(cos2, sin2, rope2.inv_freq, 32, 128, "flat dim=128")

    # 3) dim=256: half-mirror path (half = 128 is lane-aligned).
    rope3 = RotaryEmbedding(dim=256, max_seq_len=40)
    cos3, sin3 = rope3(40)
    cos3 = jax.block_until_ready(cos3)
    sin3 = jax.block_until_ready(sin3)
    _check(cos3, sin3, rope3.inv_freq, 40, 256, "mirror dim=256")

    # 4) Multi-block grid with a ragged final block, flat path (cap forced
    #    small to exercise program_id offsets + partial-block masking).
    dim4, seq4 = 64, 100
    inv4 = 1.0 / (10000 ** (jnp.arange(0, dim4, 2, dtype=jnp.float32) / dim4))
    c4, s4 = _rope_cache_flat(inv4, seq4, dim4, jnp.float32, block_rows_cap=8)
    c4 = jax.block_until_ready(c4)[:seq4][None, None]
    s4 = jax.block_until_ready(s4)[:seq4][None, None]
    _check(c4, s4, inv4, seq4, dim4, "flat multi-block dim=64")

    # 5) Multi-block + ragged final block, mirror path.
    dim5, seq5 = 256, 44
    inv5 = 1.0 / (10000 ** (jnp.arange(0, dim5, 2, dtype=jnp.float32) / dim5))
    c5, s5 = _rope_cache_mirror(inv5, seq5, dim5, jnp.float32, block_rows_cap=8)
    c5 = jax.block_until_ready(c5)[None, None]
    s5 = jax.block_until_ready(s5)[None, None]
    _check(c5, s5, inv5, seq5, dim5, "mirror multi-block dim=256")

    print("KERNEL_OK")
</pallas_src>

<mosaic_0001>
module attributes {stable_mosaic.version = 11 : i64} {
  func.func @_rope_flat_kernel(%arg0: i32, %arg1: memref<1x128xf32, #tpu.memory_space<vmem>>, %arg2: memref<1x128xf32, #tpu.memory_space<vmem>>, %arg3: memref<4x128xf32, #tpu.memory_space<vmem>>, %arg4: memref<4x128xf32, #tpu.memory_space<vmem>>) attributes {dimension_semantics = [#tpu.dimension_semantics<parallel>], iteration_bounds = array<i64: 1>, scalar_prefetch = 0 : i64, scratch_operands = 0 : i64, tpu.core_type = #tpu.core_type<tc>, window_params = [{pipeline_mode = #tpu.pipeline_mode<synchronous>, transform_indices = @transform_0, window_bounds = array<i64: 1, 128>}, {pipeline_mode = #tpu.pipeline_mode<synchronous>, transform_indices = @transform_1, window_bounds = array<i64: 1, 128>}, {transform_indices = @transform_2, window_bounds = array<i64: 4, 128>}, {transform_indices = @transform_3, window_bounds = array<i64: 4, 128>}]} {
    %c4_i32 = arith.constant 4 : i32
    %0 = arith.muli %arg0, %c4_i32 : i32
    %1 = tpu.iota {dimensions = array<i32: 0>} : vector<4x1xi32>
    %2 = vector.broadcast %0 : i32 to vector<4x1xi32>
    %3 = arith.addi %2, %1 : vector<4x1xi32>
    %4 = arith.sitofp %3 : vector<4x1xi32> to vector<4x1xf32>
    %cst = arith.constant 4.000000e+00 : f32
    %5 = vector.broadcast %cst : f32 to vector<4x1xf32>
    %6 = arith.mulf %4, %5 : vector<4x1xf32>
    %c0 = arith.constant 0 : index
    %c0_0 = arith.constant 0 : index
    %7 = vector.load %arg2[%c0, %c0_0] : memref<1x128xf32, #tpu.memory_space<vmem>>, vector<1x128xf32>
    %8 = vector.broadcast %6 : vector<4x1xf32> to vector<4x128xf32>
    %9 = vector.broadcast %7 : vector<1x128xf32> to vector<4x128xf32>
    %10 = arith.addf %8, %9 : vector<4x128xf32>
    %c0_1 = arith.constant 0 : index
    %c0_2 = arith.constant 0 : index
    %11 = vector.load %arg1[%c0_1, %c0_2] : memref<1x128xf32, #tpu.memory_space<vmem>>, vector<1x128xf32>
    %12 = vector.broadcast %11 : vector<1x128xf32> to vector<4x128xf32>
    %13 = arith.mulf %10, %12 : vector<4x128xf32>
    %cst_3 = arith.constant 0.636619746 : f32
    %14 = vector.broadcast %cst_3 : f32 to vector<4x128xf32>
    %15 = arith.mulf %13, %14 : vector<4x128xf32>
    %cst_4 = arith.constant 5.000000e-01 : f32
    %16 = vector.broadcast %cst_4 : f32 to vector<4x128xf32>
    %17 = arith.addf %15, %16 : vector<4x128xf32>
    %18 = math.floor %17 : vector<4x128xf32>
    %cst_5 = arith.constant 1.5703125 : f32
    %19 = vector.broadcast %cst_5 : f32 to vector<4x128xf32>
    %20 = arith.mulf %18, %19 : vector<4x128xf32>
    %21 = arith.subf %13, %20 : vector<4x128xf32>
    %cst_6 = arith.constant 4.83751297E-4 : f32
    %22 = vector.broadcast %cst_6 : f32 to vector<4x128xf32>
    %23 = arith.mulf %18, %22 : vector<4x128xf32>
    %24 = arith.subf %21, %23 : vector<4x128xf32>
    %cst_7 = arith.constant 7.549790e-08 : f32
    %25 = vector.broadcast %cst_7 : f32 to vector<4x128xf32>
    %26 = arith.mulf %18, %25 : vector<4x128xf32>
    %27 = arith.subf %24, %26 : vector<4x128xf32>
    %28 = arith.mulf %27, %27 : vector<4x128xf32>
    %29 = arith.mulf %27, %28 : vector<4x128xf32>
    %cst_8 = arith.constant -1.95152956E-4 : f32
    %30 = vector.broadcast %cst_8 : f32 to vector<4x128xf32>
    %31 = arith.mulf %28, %30 : vector<4x128xf32>
    %cst_9 = arith.constant 0.00833216123 : f32
    %32 = vector.broadcast %cst_9 : f32 to vector<4x128xf32>
    %33 = arith.addf %32, %31 : vector<4x128xf32>
    %34 = arith.mulf %28, %33 : vector<4x128xf32>
    %cst_10 = arith.constant -0.166666552 : f32
    %35 = vector.broadcast %cst_10 : f32 to vector<4x128xf32>
    %36 = arith.addf %35, %34 : vector<4x128xf32>
    %37 = arith.mulf %29, %36 : vector<4x128xf32>
    %38 = arith.addf %27, %37 : vector<4x128xf32>
    %cst_11 = arith.constant 5.000000e-01 : f32
    %39 = vector.broadcast %cst_11 : f32 to vector<4x128xf32>
    %40 = arith.mulf %39, %28 : vector<4x128xf32>
    %cst_12 = arith.constant 1.000000e+00 : f32
    %41 = vector.broadcast %cst_12 : f32 to vector<4x128xf32>
    %42 = arith.subf %41, %40 : vector<4x128xf32>
    %43 = arith.mulf %28, %28 : vector<4x128xf32>
    %cst_13 = arith.constant 2.44331568E-5 : f32
    %44 = vector.broadcast %cst_13 : f32 to vector<4x128xf32>
    %45 = arith.mulf %28, %44 : vector<4x128xf32>
    %cst_14 = arith.constant -0.00138873165 : f32
    %46 = vector.broadcast %cst_14 : f32 to vector<4x128xf32>
    %47 = arith.addf %46, %45 : vector<4x128xf32>
    %48 = arith.mulf %28, %47 : vector<4x128xf32>
    %cst_15 = arith.constant 0.0416666456 : f32
    %49 = vector.broadcast %cst_15 : f32 to vector<4x128xf32>
    %50 = arith.addf %49, %48 : vector<4x128xf32>
    %51 = arith.mulf %43, %50 : vector<4x128xf32>
    %52 = arith.addf %42, %51 : vector<4x128xf32>
    %53 = arith.fptosi %18 : vector<4x128xf32> to vector<4x128xi32>
    %c1_i32 = arith.constant 1 : i32
    %54 = vector.broadcast %c1_i32 : i32 to vector<4x128xi32>
    %55 = arith.andi %53, %54 : vector<4x128xi32>
    %c1_i32_16 = arith.constant 1 : i32
    %56 = vector.broadcast %c1_i32_16 : i32 to vector<4x128xi32>
    %57 = arith.cmpi eq, %55, %56 : vector<4x128xi32>
    %c2_i32 = arith.constant 2 : i32
    %58 = vector.broadcast %c2_i32 : i32 to vector<4x128xi32>
    %59 = arith.andi %53, %58 : vector<4x128xi32>
    %c2_i32_17 = arith.constant 2 : i32
    %60 = vector.broadcast %c2_i32_17 : i32 to vector<4x128xi32>
    %61 = arith.cmpi eq, %59, %60 : vector<4x128xi32>
    %c1_i32_18 = arith.constant 1 : i32
    %62 = vector.broadcast %c1_i32_18 : i32 to vector<4x128xi32>
    %63 = arith.addi %53, %62 : vector<4x128xi32>
    %c2_i32_19 = arith.constant 2 : i32
    %64 = vector.broadcast %c2_i32_19 : i32 to vector<4x128xi32>
    %65 = arith.andi %63, %64 : vector<4x128xi32>
    %c2_i32_20 = arith.constant 2 : i32
    %66 = vector.broadcast %c2_i32_20 : i32 to vector<4x128xi32>
    %67 = arith.cmpi eq, %65, %66 : vector<4x128xi32>
    %68 = arith.select %57, %52, %38 : vector<4x128xi1>, vector<4x128xf32>
    %69 = arith.select %57, %38, %52 : vector<4x128xi1>, vector<4x128xf32>
    %cst_21 = arith.constant 0.000000e+00 : f32
    %70 = vector.broadcast %cst_21 : f32 to vector<4x128xf32>
    %71 = arith.subf %70, %68 : vector<4x128xf32>
    %72 = arith.select %61, %71, %68 : vector<4x128xi1>, vector<4x128xf32>
    %cst_22 = arith.constant 0.000000e+00 : f32
    %73 = vector.broadcast %cst_22 : f32 to vector<4x128xf32>
    %74 = arith.subf %73, %69 : vector<4x128xf32>
    %75 = arith.select %67, %74, %69 : vector<4x128xi1>, vector<4x128xf32>
    %c0_23 = arith.constant 0 : index
    %c0_24 = arith.constant 0 : index
    %76 = vector.load %arg3[%c0_23, %c0_24] : memref<4x128xf32, #tpu.memory_space<vmem>>, vector<4x128xf32>
    tpu.vector_store %arg3[%c0_23, %c0_24], %75 {strides = array<i32>} : memref<4x128xf32, #tpu.memory_space<vmem>>, vector<4x128xf32>,
    %c0_25 = arith.constant 0 : index
    %c0_26 = arith.constant 0 : index
    %77 = vector.load %arg4[%c0_25, %c0_26] : memref<4x128xf32, #tpu.memory_space<vmem>>, vector<4x128xf32>
    tpu.vector_store %arg4[%c0_25, %c0_26], %72 {strides = array<i32>} : memref<4x128xf32, #tpu.memory_space<vmem>>, vector<4x128xf32>,
    return
  }
  func.func @transform_0(%arg0: i32) -> (i32, i32) {
    %c0_i32 = arith.constant 0 : i32
    %c0_i32_0 = arith.constant 0 : i32
    %c0_i32_1 = arith.constant 0 : i32
    return %c0_i32, %c0_i32_0 : i32, i32
  }
  func.func @transform_1(%arg0: i32) -> (i32, i32) {
    %c0_i32 = arith.constant 0 : i32
    %c0_i32_0 = arith.constant 0 : i32
    %c0_i32_1 = arith.constant 0 : i32
    return %c0_i32, %c0_i32_0 : i32, i32
  }
  func.func @transform_2(%arg0: i32) -> (i32, i32) {
    %c0_i32 = arith.constant 0 : i32
    %c0_i32_0 = arith.constant 0 : i32
    return %arg0, %c0_i32 : i32, i32
  }
  func.func @transform_3(%arg0: i32) -> (i32, i32) {
    %c0_i32 = arith.constant 0 : i32
    %c0_i32_0 = arith.constant 0 : i32
    return %arg0, %c0_i32 : i32, i32
  }
}

</mosaic_0001>

<bundles_post_ra>
// kernel: tpu_custom_call.1
= control target key start
LH: loop header
LB: loop body
LE: loop exit
PB: predicated region body
PF: predicated region fallthrough
CT: control target
= control target key end

     0   :  { %9 = vsyncpa [#allocation3], 0  ;;  %s229_s0 = inlined_call_operand.hbm [shape: f32[1,128], index: 0, kind: input, shape index: {}]   ;;  %s230_s1 = inlined_call_operand.vmem [shape: f32[1,128], index: 1, kind: input, shape index: {}]   ;;  %s231_s2 = inlined_call_operand.hbm [shape: f32[4,128], index: 2, kind: output, shape index: {0}]   ;;  %s232_s3 = inlined_call_operand.hbm [shape: f32[4,128], index: 3, kind: output, shape index: {1}]  }
   0x1   :  { %10 = vsyncpa [#allocation4], 0 }
   0x2   :  { %11 = vsyncpa [#allocation7], 0  ;;  %s194_s12 = smov [#allocation2]  }
   0x3   :  { %s18_s13 = sshll.u32 %s194_s12, 4  ;;  %s19_s13 = int_to_ptr.vmem [resolvable:$true] %s18_s13 }
   0x4   :  { %s136_s14 = scalar_lea.vmem %s19_s13, 16  ;;  %s140_s15 = scalar_lea.vmem %s19_s13, 32 }
   0x5   :  { %p137_p0 = scmp.ne.s32.totalorder %s19_s13, %s136_s14  ;;  %p141_p1 = scmp.lt.s32.totalorder %s19_s13, %s19_s13 }
   0x6   :  { %p142_p2 = scmp.lt.s32.totalorder %s140_s15, %s136_s14 }
   0x8   :  { %p143_p3 = por %p142_p2, %p141_p1 }
   0xa   :  { %p144_p4 = pnand %p143_p3, %p137_p0 }
   0xc   :  { %147 = shalt.err (!%p144_p4)
}
   0xd   :  { %21 = dma.hbm_to_vmem [thread:$0]  %s229_s0, 16, %s19_s13, [#allocation3]  }
   0xe   :  { %188 = dma.done.wait [#allocation3], 16  }
   0xf   :  { %189 = vsyncadd [#allocation3], 4294967280  ;;  %v28_v0 = vlaneseq  ;;  %v121_v4 = vld [vmem:[%s230_s1] ss:$0 sm:$0xff]  ;;  %s195_s0 = smov [#allocation5]   ;;  %s196_s20 = smov [#allocation6]  }
  0x10   :  { %v122_v5 = vld [vmem:[#allocation2] ss:$0 sm:$0xff]  ;;  %s98_s1 = sshll.u32 %s195_s0, 4  ;;  %s108_s21 = sshll.u32 %s196_s20, 4  ;;  %s99_s1 = int_to_ptr.vmem [resolvable:$true] %s98_s1  ;;  %s109_s21 = int_to_ptr.vmem [resolvable:$true] %s108_s21 }
  0x11   :  { %v29_v1 = vshrl.u32 %v28_v0, 7  ;;  %s148_s22 = scalar_lea.vmem %s99_s1, 64  ;;  %p153_p6 = scmp.lt.s32.totalorder %s99_s1, %s99_s1 }
  0x12   :  { %p149_p5 = scmp.ne.s32.totalorder %s99_s1, %s148_s22  ;;  %p154_p7 = scmp.lt.s32.totalorder %s148_s22, %s148_s22 }
  0x13   :  { %v32_v2 = vcvt.s32.f32 %v29_v1 }
  0x14   :  { %p155_p8 = por %p154_p7, %p153_p6 }
  0x15   :  { %v33_v3 = vmul.f32 4.0, %v32_v2 }
  0x16   :  { %p156_p9 = pnand %p155_p8, %p149_p5 }
  0x17   :  { %v41_v6 = vadd.f32 %v121_v4, %v33_v3 }
  0x19   :  { %v49_v7 = vmul.f32 %v122_v5, %v41_v6 }
  0x1b   :  { %v50_v8 = vmul.f32 0.63661975, %v49_v7 }
  0x1d   :  { %v51_v9 = vadd.f32 0.5, %v50_v8 }
  0x1f   :  { %v52_v10 = vfloor.f32 %v51_v9 }
  0x21   :  { %v53_v11 = vmul.f32 1.5703125, %v52_v10  ;;  %v55_v12 = vmul.f32 0.0004837513, %v52_v10  ;;  %v57_v14 = vmul.f32 7.54979e-08, %v52_v10  ;;  %v123_v17 = vtrunc.f32 %v52_v10 }
  0x23   :  { %v54_v13 = vsub.f32 %v49_v7, %v53_v11  ;;  %v124_v21 = vcvt.f32.s32 %v123_v17 }
  0x25   :  { %v56_v15 = vsub.f32 %v54_v13, %v55_v12  ;;  %v81_v29 = vadd.s32 1, %v124_v21  ;;  %v77_v31 = vand.u32 1, %v124_v21  ;;  %v79_v37 = vand.u32 2, %v124_v21 }
  0x27   :  { %v58_v16 = vsub.f32 %v56_v15, %v57_v14  ;;  %v82_v36 = vand.u32 2, %v81_v29  ;;  %vm78_vm0 = vcmp.eq.s32.totalorder %v77_v31, 1  ;;  %vm80_vm2 = vcmp.eq.s32.totalorder %v79_v37, 2 }
  0x29   :  { %v59_v18 = vmul.f32 %v58_v16, %v58_v16  ;;  %vm83_vm1 = vcmp.eq.s32.totalorder %v82_v36, 2 }
  0x2b   :  { %v61_v19 = vmul.f32 -0.00019515296, %v59_v18  ;;  %v70_v20 = vmul.f32 2.4433157e-05, %v59_v18  ;;  %v67_v23 = vmul.f32 0.5, %v59_v18  ;;  %v60_v25 = vmul.f32 %v59_v18, %v58_v16 }
  0x2c   :  { %v69_v27 = vmul.f32 %v59_v18, %v59_v18 }
  0x2d   :  { %v62_v22 = vadd.f32 0.008332161, %v61_v19  ;;  %v71_v24 = vadd.f32 -0.0013887316, %v70_v20  ;;  %v68_v32 = vsub.f32 1.0, %v67_v23 }
  0x2f   :  { %v63_v26 = vmul.f32 %v62_v22, %v59_v18  ;;  %v72_v28 = vmul.f32 %v71_v24, %v59_v18 }
  0x31   :  { %v64_v30 = vadd.f32 -0.16666655, %v63_v26  ;;  %v73_v33 = vadd.f32 0.041666646, %v72_v28 }
  0x33   :  { %v65_v34 = vmul.f32 %v64_v30, %v60_v25  ;;  %v74_v35 = vmul.f32 %v73_v33, %v69_v27 }
  0x35   :  { %v66_v38 = vadd.f32 %v65_v34, %v58_v16  ;;  %v75_v39 = vadd.f32 %v74_v35, %v68_v32 }
  0x37   :  { %v85_v40 = vsel %vm78_vm0, %v66_v38, %v75_v39  ;;  %v84_v41 = vsel %vm78_vm0, %v75_v39, %v66_v38 }
  0x38   :  { %v88_v42 = vsub.f32 0.0, %v85_v40  ;;  %v86_v43 = vsub.f32 0.0, %v84_v41 }
  0x3a   :  { %v89_v44 = vsel %vm83_vm1, %v88_v42, %v85_v40  ;;  %v87_v45 = vsel %vm80_vm2, %v86_v43, %v84_v41 }
  0x3b   :  { %90 = vst [vmem:[#allocation5] sm:$0xf] %v89_v44  ;;  %91 = vst [vmem:[#allocation6] sm:$0xf] %v87_v45 }
  0x3c   :  { %159 = shalt.err (!%p156_p9)
}
  0x3d   :  { %101 = dma.vmem_to_hbm [thread:$0]  %s99_s1, 64, %s231_s2, [#allocation4]  }
  0x3e   :  { %s168_s25 = scalar_lea.vmem %s109_s21, 64  ;;  %p173_p11 = scmp.lt.s32.totalorder %s109_s21, %s109_s21 }
  0x3f   :  { %p169_p10 = scmp.ne.s32.totalorder %s109_s21, %s168_s25  ;;  %p174_p12 = scmp.lt.s32.totalorder %s168_s25, %s168_s25 }
  0x41   :  { %p175_p13 = por %p174_p12, %p173_p11 }
  0x43   :  { %p176_p0 = pnand %p175_p13, %p169_p10 }
  0x45   :  { %179 = shalt.err (!%p176_p0)
}
  0x46   :  { %111 = dma.vmem_to_hbm [thread:$0]  %s109_s21, 64, %s232_s3, [#allocation7]  }
  0x47   :  { %190 = dma.done.wait [#allocation4], 64  }
  0x48   :  { %191 = vsyncadd [#allocation4], 4294967232 }
  0x49   :  { %192 = dma.done.wait [#allocation7], 64  }
  0x4a   :  { %193 = vsyncadd [#allocation7], 4294967232 }
  0x4b   :  { %118 = vsyncpa [#allocation3], 1 }
  0x4c   :  { %119 = vsyncpa [#allocation4], 1 }
  0x4d   :  { %120 = vsyncpa [#allocation7], 1 }

</bundles_post_ra>
